<compile_context>
chip_gen: v5e
topology: v5e:2x2
jax: 0.10.0
libtpu: 0.0.40
codegen_flags: <defaults>
</compile_context>

<pallas_src>
import jax
import jax.numpy as jnp
from jax import lax
from jax.experimental import pallas as pl
from jax.experimental.pallas import tpu as pltpu


# Cap on the batch tile. x tile is lane-padded to 128 -> TILE_B*128*4 B per buffer,
# double-buffered, plus the (also lane-padded) output tile: ~16 MiB at 8192 rows,
# comfortably inside the 32 MiB scoped VMEM default on every generation.
_MAX_TILE_B = 8192


def _round_up(x: int, m: int) -> int:
    return ((x + m - 1) // m) * m


def _linear_kernel(x_ref, w_ref, b_ref, o_ref):
    # x_ref: (TILE_B, 32), w_ref: (4, 32) torch-native layout, b_ref: (1, 4)
    # Contract x's feature axis (1) against weight's in_features axis (1):
    # result is (TILE_B, 4), accumulated in f32 on the MXU.
    acc = lax.dot_general(
        x_ref[...],
        w_ref[...],
        dimension_numbers=(((1,), (1,)), ((), ())),
        preferred_element_type=jnp.float32,
    )
    o_ref[...] = (acc + b_ref[...]).astype(o_ref.dtype)


def stage2_forward(x, weight, bias):
    """y = x @ weight.T + bias, matching torch.nn.Linear(32, 4).

    x:      (B, 32) float32
    weight: (4, 32) float32   (torch layout: [out_features, in_features])
    bias:   (4,)    float32
    """
    B, in_f = x.shape
    out_f, _ = weight.shape

    # Batch tile: multiple of 8 (f32 sublane), capped for VMEM headroom.
    tile_b = min(_MAX_TILE_B, _round_up(max(B, 1), 8))
    b_pad = _round_up(B, tile_b)
    if b_pad != B:
        x = jnp.pad(x, ((0, b_pad - B), (0, 0)))

    b2d = bias.reshape(1, out_f)

    y = pl.pallas_call(
        _linear_kernel,
        out_shape=jax.ShapeDtypeStruct((b_pad, out_f), x.dtype),
        grid_spec=pl.GridSpec(
            grid=(b_pad // tile_b,),
            in_specs=[
                # x: tiled along batch, features (=32) are the full last dim.
                pl.BlockSpec((tile_b, in_f), lambda i: (i, 0)),
                # weight: full (4, 32), constant index -> resident in VMEM.
                pl.BlockSpec((out_f, in_f), lambda i: (0, 0)),
                # bias: full (1, 4), constant index -> resident in VMEM.
                pl.BlockSpec((1, out_f), lambda i: (0, 0)),
            ],
            out_specs=pl.BlockSpec((tile_b, out_f), lambda i: (i, 0)),
        ),
        compiler_params=pltpu.CompilerParams(
            dimension_semantics=("parallel",),
        ),
    )(x, weight, b2d)

    return y[:B] if b_pad != B else y


if __name__ == "__main__":
    key = jax.random.PRNGKey(0)
    kx, kw, kb, kx2 = jax.random.split(key, 4)

    B, IN, OUT = 8, 32, 4

    # Deterministic "parameter init" mimicking nn.Linear's uniform(-1/sqrt(IN), 1/sqrt(IN)).
    bound = 1.0 / (IN ** 0.5)
    weight = jax.random.uniform(kw, (OUT, IN), jnp.float32, -bound, bound)
    bias = jax.random.uniform(kb, (OUT,), jnp.float32, -bound, bound)

    # Small batch (matches the module's natural usage).
    x = jax.random.normal(kx, (B, IN), jnp.float32)
    y = jax.block_until_ready(stage2_forward(x, weight, bias))
    y_ref = x @ weight.T + bias
    assert y.shape == (B, OUT)
    assert jnp.allclose(y, y_ref, atol=1e-5, rtol=1e-5)

    # Non-multiple batch to exercise the tiling + padding path.
    B2 = 50
    x2 = jax.random.normal(kx2, (B2, IN), jnp.float32)
    y2 = jax.block_until_ready(stage2_forward(x2, weight, bias))
    y2_ref = x2 @ weight.T + bias
    assert y2.shape == (B2, OUT)
    assert jnp.allclose(y2, y2_ref, atol=1e-5, rtol=1e-5)

    print("KERNEL_OK")
</pallas_src>

<mosaic_0001>
module attributes {stable_mosaic.version = 11 : i64} {
  func.func @_linear_kernel(%arg0: i32, %arg1: memref<8x32xf32, #tpu.memory_space<vmem>>, %arg2: memref<4x32xf32, #tpu.memory_space<vmem>>, %arg3: memref<1x4xf32, #tpu.memory_space<vmem>>, %arg4: memref<8x4xf32, #tpu.memory_space<vmem>>) attributes {dimension_semantics = [#tpu.dimension_semantics<parallel>], iteration_bounds = array<i64: 1>, scalar_prefetch = 0 : i64, scratch_operands = 0 : i64, tpu.core_type = #tpu.core_type<tc>, window_params = [{transform_indices = @transform_0, window_bounds = array<i64: 8, 32>}, {pipeline_mode = #tpu.pipeline_mode<synchronous>, transform_indices = @transform_1, window_bounds = array<i64: 4, 32>}, {pipeline_mode = #tpu.pipeline_mode<synchronous>, transform_indices = @transform_2, window_bounds = array<i64: 1, 4>}, {transform_indices = @transform_3, window_bounds = array<i64: 8, 4>}]} {
    %c0 = arith.constant 0 : index
    %c0_0 = arith.constant 0 : index
    %0 = vector.load %arg1[%c0, %c0_0] : memref<8x32xf32, #tpu.memory_space<vmem>>, vector<8x32xf32>
    %c0_1 = arith.constant 0 : index
    %c0_2 = arith.constant 0 : index
    %1 = vector.load %arg2[%c0_1, %c0_2] : memref<4x32xf32, #tpu.memory_space<vmem>>, vector<4x32xf32>
    %cst = arith.constant dense<0.000000e+00> : vector<8x4xf32>
    %2 = tpu.matmul %0, %1, %cst {dimension_numbers = #tpu.dot_dimension_numbers<[1], [1], [0], [0], [0, 0, 1, 0], [], []>} : vector<8x32xf32>, vector<4x32xf32>, vector<8x4xf32> -> vector<8x4xf32>
    %c0_3 = arith.constant 0 : index
    %c0_4 = arith.constant 0 : index
    %3 = vector.load %arg3[%c0_3, %c0_4] : memref<1x4xf32, #tpu.memory_space<vmem>>, vector<1x4xf32>
    %4 = vector.broadcast %3 : vector<1x4xf32> to vector<8x4xf32>
    %5 = arith.addf %2, %4 : vector<8x4xf32>
    %c0_5 = arith.constant 0 : index
    %c0_6 = arith.constant 0 : index
    %6 = vector.load %arg4[%c0_5, %c0_6] : memref<8x4xf32, #tpu.memory_space<vmem>>, vector<8x4xf32>
    tpu.vector_store %arg4[%c0_5, %c0_6], %5 {strides = array<i32>} : memref<8x4xf32, #tpu.memory_space<vmem>>, vector<8x4xf32>,
    return
  }
  func.func @transform_0(%arg0: i32) -> (i32, i32) {
    %c0_i32 = arith.constant 0 : i32
    %c0_i32_0 = arith.constant 0 : i32
    return %arg0, %c0_i32 : i32, i32
  }
  func.func @transform_1(%arg0: i32) -> (i32, i32) {
    %c0_i32 = arith.constant 0 : i32
    %c0_i32_0 = arith.constant 0 : i32
    %c0_i32_1 = arith.constant 0 : i32
    return %c0_i32, %c0_i32_0 : i32, i32
  }
  func.func @transform_2(%arg0: i32) -> (i32, i32) {
    %c0_i32 = arith.constant 0 : i32
    %c0_i32_0 = arith.constant 0 : i32
    %c0_i32_1 = arith.constant 0 : i32
    return %c0_i32, %c0_i32_0 : i32, i32
  }
  func.func @transform_3(%arg0: i32) -> (i32, i32) {
    %c0_i32 = arith.constant 0 : i32
    %c0_i32_0 = arith.constant 0 : i32
    return %arg0, %c0_i32 : i32, i32
  }
}

</mosaic_0001>

<bundles_post_ra>
// kernel: tpu_custom_call.1
= control target key start
LH: loop header
LB: loop body
LE: loop exit
PB: predicated region body
PF: predicated region fallthrough
CT: control target
= control target key end

     0   :  { %8 = vsyncpa [#allocation3], 0  ;;  %s174_s0 = inlined_call_operand.hbm [shape: f32[8,32], index: 0, kind: input, shape index: {}]   ;;  %s175_s1 = inlined_call_operand.hbm [shape: f32[4,32], index: 1, kind: input, shape index: {}]   ;;  %s176_s2 = inlined_call_operand.vmem [shape: f32[1,4], index: 2, kind: input, shape index: {}]   ;;  %s177_s3 = inlined_call_operand.vmem [shape: f32[8,4], index: 3, kind: output, shape index: {}]  }
   0x1   :  { %s15_s14 = sshll.u32 %s174_s0, 4  ;;  %s16_s14 = int_to_ptr.hbm [resolvable:$true] %s15_s14 }
   0x2   :  { %9 = vsyncpa [#allocation5], 0  ;;  %s140_s15 = smov [#allocation2]   ;;  %s26_s19 = sshll.u32 %s175_s1, 4  ;;  %s27_s19 = int_to_ptr.hbm [resolvable:$true] %s26_s19 }
   0x3   :  { %s17_s16 = sshll.u32 %s140_s15, 4  ;;  %s141_s20 = smov [#allocation4]   ;;  %s18_s16 = int_to_ptr.vmem [resolvable:$true] %s17_s16 }
   0x4   :  { %20 = dma.hbm_to_vmem [thread:$0]  %s16_s14, 128, %s18_s16, [#allocation3]  }
   0x5   :  { %s28_s21 = sshll.u32 %s141_s20, 4  ;;  %s29_s21 = int_to_ptr.vmem [resolvable:$true] %s28_s21 }
   0x6   :  { %31 = dma.hbm_to_vmem [thread:$0]  %s27_s19, 64, %s29_s21, [#allocation5]  }
   0x7   :  { %136 = dma.done.wait [#allocation3], 128  }
   0x8   :  { %137 = vsyncadd [#allocation3], 4294967168 }
   0x9   :  { %138 = dma.done.wait [#allocation5], 64  }
   0xa   :  { %139 = vsyncadd [#allocation5], 4294967232  ;;  %vm48_vm0 = vcmask 261120   ;;  %v43_v0 = vld [vmem:[#allocation4] sm:$0xf]  ;;  %v42_v1 = vld [vmem:[#allocation2] sm:$0xff] }
   0xb   :  { %83 = vmatpush.xpose.msk.msra.mxu0 %vm48_vm0, %v43_v0  ;;  %v87_v2 = vld [vmem:[%s176_s2] ss:$0 sm:$0xff]  ;;  %vm75_vm1 = vcmask 31744  }
   0xe   :  { %84 = vmatmul.msk.f32.vlgmr.msra.gmra.mxu0 %vm48_vm0, %v42_v1 }
  0x8b   :  { %v72_v3 = vpop.f32.mrf.mxu0 }
  0x8c   :  { %v73_v4 = vadd.f32 %v87_v2, %v72_v3 }
  0x8e   :  { %76 = vst.msk [vmem:[%s177_s3] sm:$0xff] %vm75_vm1, %v73_v4 }
  0x8f   :  { %81 = vsyncpa [#allocation3], 1 }
  0x90   :  { %82 = vsyncpa [#allocation5], 1 }

</bundles_post_ra>
